<compile_context>
chip_gen: v5e
topology: v5e:2x2
jax: 0.10.0
libtpu: 0.0.40
codegen_flags: <defaults>
</compile_context>

<pallas_src>
import functools

import jax
import jax.numpy as jnp
from jax.experimental import pallas as pl
from jax.experimental.pallas import tpu as pltpu


def _round_up(v, m):
    return ((v + m - 1) // m) * m


def _gelu_new(x):
    # GPT2 "gelu_new": 0.5*x*(1 + tanh(sqrt(2/pi)*(x + 0.044715*x^3)))
    # factored as (c*x)*(1 + 0.044715*x*x) inside the tanh (one fewer multiply).
    c = jnp.asarray(0.7978845608028654, dtype=x.dtype)   # sqrt(2/pi)
    a = jnp.asarray(0.044715, dtype=x.dtype)
    inner = (c * x) * (1.0 + a * (x * x))
    return 0.5 * x * (1.0 + jnp.tanh(inner))


# ----------------------- hardware-aware configuration ------------------------

def _tpu_generation():
    try:
        dev = jax.devices()[0]
        if dev.platform != "tpu":
            return "unknown"
        kind = dev.device_kind.lower()
    except Exception:
        return "unknown"
    if "v5e" in kind or "v5 lite" in kind or "v5litepod" in kind:
        return "v5e"
    if "v6" in kind:
        return "v6e"
    if "v7" in kind:
        return "v7x"
    return "unknown"


# usable scoped-VMEM budget per generation (physical: v5e/v6e 128 MiB, v7x 64 MiB)
_VMEM_BUDGET = {"v5e": 100 << 20, "v6e": 100 << 20, "v7x": 48 << 20}


# --------------------------------- kernels -----------------------------------

def _mlp_kernel_resident(x_ref, wfc_ref, bfc_ref, wproj_ref, bproj_ref, o_ref,
                         *, gelu_dtype):
    # Full weights resident in VMEM: one fused step per token tile, no scratch.
    h = jnp.dot(x_ref[...], wfc_ref[...], preferred_element_type=jnp.float32)
    h = (h + bfc_ref[...]).astype(gelu_dtype)
    h = _gelu_new(h)
    y = jnp.dot(h.astype(wproj_ref.dtype), wproj_ref[...],
                preferred_element_type=jnp.float32)
    # Dropout(resid_pdrop) is identity in eval mode.
    o_ref[...] = (y + bproj_ref[...]).astype(o_ref.dtype)


def _mlp_kernel_streamed(x_ref, wfc_ref, bfc_ref, wproj_ref, bproj_ref, o_ref,
                         acc_ref, *, gelu_dtype):
    # Fallback when the weights don't fit VMEM: stream I-dim slices and
    # accumulate the second matmul in an f32 scratch tile.
    k = pl.program_id(1)

    @pl.when(k == 0)
    def _():
        acc_ref[...] = jnp.zeros_like(acc_ref)

    h = jnp.dot(x_ref[...], wfc_ref[...], preferred_element_type=jnp.float32)
    h = (h + bfc_ref[...]).astype(gelu_dtype)
    h = _gelu_new(h)
    acc_ref[...] += jnp.dot(h.astype(wproj_ref.dtype), wproj_ref[...],
                            preferred_element_type=jnp.float32)

    @pl.when(k == pl.num_programs(1) - 1)
    def _():
        o_ref[...] = (acc_ref[...] + bproj_ref[...]).astype(o_ref.dtype)


# ------------------------------- host wrapper ---------------------------------

def prepare_mlp_params(w_fc, b_fc, w_proj, b_proj, compute_dtype=jnp.bfloat16):
    """Pad params to lane-dense shapes and cast once (hoisted out of hot path)."""
    D, I = w_fc.shape
    assert w_proj.shape == (I, D) and b_fc.shape == (I,) and b_proj.shape == (D,)
    Dp, Ip = _round_up(D, 128), _round_up(I, 128)
    wfc = jnp.pad(w_fc.astype(compute_dtype), ((0, Dp - D), (0, Ip - I)))
    bfc = jnp.pad(b_fc.astype(jnp.float32), (0, Ip - I)).reshape(1, Ip)
    wproj = jnp.pad(w_proj.astype(compute_dtype), ((0, Ip - I), (0, Dp - D)))
    bproj = jnp.pad(b_proj.astype(jnp.float32), (0, Dp - D)).reshape(1, Dp)
    return wfc, bfc, wproj, bproj


def decision_transformer_gpt2_mlp_prepared(x, wfc, bfc, wproj, bproj, *,
                                           tm=256, out_dtype=None):
    """x: (B, T, D); prepared params: wfc (Dp, Ip), bfc (1, Ip), wproj (Ip, Dp), bproj (1, Dp)."""
    B, T, D = x.shape
    Dp, Ip = wfc.shape
    assert wproj.shape == (Ip, Dp) and Dp >= D
    compute_dtype = wfc.dtype
    out_dtype = out_dtype or x.dtype

    gen = _tpu_generation()
    budget = _VMEM_BUDGET.get(gen, 48 << 20)
    num_tc = 2 if gen == "v7x" else 1
    # v5e has no bf16 VPU/EUP path; keep the activation math in f32 there.
    gelu_dtype = compute_dtype if gen in ("v6e", "v7x") else jnp.float32

    # ---- token tiling: multiples of 16 (bf16 sublane packing) ----
    M = B * T
    tm = max(16, (min(int(tm), _round_up(M, 16)) // 16) * 16)
    if num_tc >= 2 and M >= 32:
        # ensure ni >= 2 so the "parallel" axis shards across both TensorCores
        half = max(16, ((_round_up(M, 16) // 2) // 16) * 16)
        tm = min(tm, half)
    Mp = _round_up(M, tm)
    ni = Mp // tm

    # ---- intermediate-dim tiling: prefer full weight residency (nk == 1) ----
    dsz = jnp.dtype(compute_dtype).itemsize
    osz = jnp.dtype(out_dtype).itemsize

    def footprint(ti, nk):
        wk_bufs = 1 if nk == 1 else 2
        return (2 * tm * Dp * dsz             # x tile (double-buffered)
                + wk_bufs * Dp * ti * dsz     # W_fc slice
                + wk_bufs * ti * 4            # b_fc slice (f32)
                + wk_bufs * ti * Dp * dsz     # W_proj slice
                + Dp * 4                      # b_proj (resident)
                + 2 * tm * Dp * osz           # output tile (double-buffered)
                + tm * ti * 4                 # h intermediate (f32)
                + (0 if nk == 1 else tm * Dp * 4))   # f32 accumulator scratch

    if footprint(Ip, 1) <= budget:
        ti, nk = Ip, 1
    else:
        ti = 128
        for cand in range(Ip - 128, 0, -128):
            if Ip % cand == 0 and footprint(cand, Ip // cand) <= budget:
                ti = cand
                break
        nk = Ip // ti

    fp = footprint(ti, nk)
    vmem_limit = int(min(budget, max(fp + (6 << 20), 32 << 20)))

    x2 = jnp.pad(x.reshape(M, D).astype(compute_dtype),
                 ((0, Mp - M), (0, Dp - D)))

    if nk == 1:
        kernel = functools.partial(_mlp_kernel_resident, gelu_dtype=gelu_dtype)

        def const1(shape):
            # constant block index across the grid -> single buffer, stays resident
            return pl.BlockSpec(shape, lambda i: (0, 0),
                                pipeline_mode=pl.Buffered(1))

        grid_spec = pltpu.PrefetchScalarGridSpec(
            num_scalar_prefetch=0,
            grid=(ni,),
            in_specs=[
                pl.BlockSpec((tm, Dp), lambda i: (i, 0)),   # x tile
                const1((Dp, Ip)),                           # W_fc (resident)
                const1((1, Ip)),                            # b_fc
                const1((Ip, Dp)),                           # W_proj (resident)
                const1((1, Dp)),                            # b_proj
            ],
            out_specs=pl.BlockSpec((tm, Dp), lambda i: (i, 0)),
        )
        dim_sem = ("parallel",)
    else:
        kernel = functools.partial(_mlp_kernel_streamed, gelu_dtype=gelu_dtype)

        def serp(to_block):
            # serpentine over k: reuses the boundary weight slice across i.
            def imap(i, k):
                parity = i % 2
                kk = parity * (nk - 1 - k) + (1 - parity) * k
                return to_block(kk)
            return imap

        grid_spec = pltpu.PrefetchScalarGridSpec(
            num_scalar_prefetch=0,
            grid=(ni, nk),
            in_specs=[
                pl.BlockSpec((tm, Dp), lambda i, k: (i, 0)),        # x tile
                pl.BlockSpec((Dp, ti), serp(lambda kk: (0, kk))),   # W_fc slice
                pl.BlockSpec((1, ti), serp(lambda kk: (0, kk))),    # b_fc slice
                pl.BlockSpec((ti, Dp), serp(lambda kk: (kk, 0))),   # W_proj slice
                pl.BlockSpec((1, Dp), lambda i, k: (0, 0),
                             pipeline_mode=pl.Buffered(1)),         # b_proj
            ],
            out_specs=pl.BlockSpec((tm, Dp), lambda i, k: (i, 0)),
            scratch_shapes=[pltpu.VMEM((tm, Dp), jnp.float32)],
        )
        dim_sem = ("parallel", "arbitrary")

    out = pl.pallas_call(
        kernel,
        out_shape=jax.ShapeDtypeStruct((Mp, Dp), out_dtype),
        grid_spec=grid_spec,
        compiler_params=pltpu.CompilerParams(
            dimension_semantics=dim_sem,
            vmem_limit_bytes=vmem_limit),
    )(x2, wfc, bfc, wproj, bproj)

    return out[:M, :D].reshape(B, T, D)


def decision_transformer_gpt2_mlp(x, w_fc, b_fc, w_proj, b_proj, *,
                                  tm=256, compute_dtype=jnp.bfloat16,
                                  out_dtype=None):
    """Convenience wrapper taking raw (unpadded) Conv1D params."""
    params = prepare_mlp_params(w_fc, b_fc, w_proj, b_proj, compute_dtype)
    return decision_transformer_gpt2_mlp_prepared(x, *params, tm=tm,
                                                  out_dtype=out_dtype)


def _reference(x, w_fc, b_fc, w_proj, b_proj):
    h = jnp.einsum("btd,di->bti", x, w_fc) + b_fc
    h = _gelu_new(h)
    y = jnp.einsum("bti,id->btd", h, w_proj) + b_proj
    return y


if __name__ == "__main__":
    # Small config consistent with the module: hidden=32, intermediate=4*hidden.
    batch, seq, hidden = 2, 8, 32
    intermediate = 4 * hidden  # 128

    key = jax.random.PRNGKey(0)
    kx, k1, k2 = jax.random.split(key, 3)

    x = jax.random.normal(kx, (batch, seq, hidden), dtype=jnp.float32)
    # Conv1D init: weight ~ N(0, 0.02), bias zeros.
    w_fc = 0.02 * jax.random.normal(k1, (hidden, intermediate), dtype=jnp.float32)
    b_fc = jnp.zeros((intermediate,), dtype=jnp.float32)
    w_proj = 0.02 * jax.random.normal(k2, (intermediate, hidden), dtype=jnp.float32)
    b_proj = jnp.zeros((hidden,), dtype=jnp.float32)

    # Pad/cast the params once (hoisted out of the hot path) and jit the apply.
    prepared = prepare_mlp_params(w_fc, b_fc, w_proj, b_proj)
    apply_fn = jax.jit(
        lambda xx: decision_transformer_gpt2_mlp_prepared(xx, *prepared))

    out = jax.block_until_ready(apply_fn(x))

    # Reference in f32 using the bf16-rounded operands the kernel actually sees.
    def rnd(a):
        return a.astype(jnp.bfloat16).astype(jnp.float32)

    ref = _reference(rnd(x), rnd(w_fc), b_fc, rnd(w_proj), b_proj)

    assert out.shape == (batch, seq, hidden)
    assert out.dtype == x.dtype
    max_err = float(jnp.max(jnp.abs(out - ref)))
    assert jnp.allclose(out, ref, atol=1e-2, rtol=1e-2), f"mismatch: {max_err}"

    # TODO(synk): dropout (resid_pdrop) is a no-op in eval mode; training-mode
    # stochastic dropout would use pltpu.prng_seed/prng_random_bits.
    print("KERNEL_OK")
</pallas_src>

<mosaic_0001>
module attributes {stable_mosaic.version = 11 : i64} {
  func.func @_mlp_kernel_resident(%arg0: i32, %arg1: memref<16x128xbf16, #tpu.memory_space<vmem>>, %arg2: memref<128x128xbf16, #tpu.memory_space<vmem>>, %arg3: memref<1x128xf32, #tpu.memory_space<vmem>>, %arg4: memref<128x128xbf16, #tpu.memory_space<vmem>>, %arg5: memref<1x128xf32, #tpu.memory_space<vmem>>, %arg6: memref<16x128xf32, #tpu.memory_space<vmem>>) attributes {dimension_semantics = [#tpu.dimension_semantics<parallel>], iteration_bounds = array<i64: 1>, scalar_prefetch = 0 : i64, scratch_operands = 0 : i64, tpu.core_type = #tpu.core_type<tc>, window_params = [{transform_indices = @transform_0, window_bounds = array<i64: 16, 128>}, {pipeline_mode = #tpu.pipeline_mode<synchronous>, transform_indices = @transform_1, window_bounds = array<i64: 128, 128>}, {pipeline_mode = #tpu.pipeline_mode<synchronous>, transform_indices = @transform_2, window_bounds = array<i64: 1, 128>}, {pipeline_mode = #tpu.pipeline_mode<synchronous>, transform_indices = @transform_3, window_bounds = array<i64: 128, 128>}, {pipeline_mode = #tpu.pipeline_mode<synchronous>, transform_indices = @transform_4, window_bounds = array<i64: 1, 128>}, {transform_indices = @transform_5, window_bounds = array<i64: 16, 128>}]} {
    %c0 = arith.constant 0 : index
    %c0_0 = arith.constant 0 : index
    %0 = vector.load %arg1[%c0, %c0_0] : memref<16x128xbf16, #tpu.memory_space<vmem>>, vector<16x128xbf16>
    %c0_1 = arith.constant 0 : index
    %c0_2 = arith.constant 0 : index
    %1 = vector.load %arg2[%c0_1, %c0_2] : memref<128x128xbf16, #tpu.memory_space<vmem>>, vector<128x128xbf16>
    %cst = arith.constant dense<0.000000e+00> : vector<16x128xf32>
    %2 = tpu.matmul %0, %1, %cst {dimension_numbers = #tpu.dot_dimension_numbers<[1], [0], [0], [1], [0, 0, 1, 1], [], []>} : vector<16x128xbf16>, vector<128x128xbf16>, vector<16x128xf32> -> vector<16x128xf32>
    %c0_3 = arith.constant 0 : index
    %c0_4 = arith.constant 0 : index
    %3 = vector.load %arg3[%c0_3, %c0_4] : memref<1x128xf32, #tpu.memory_space<vmem>>, vector<1x128xf32>
    %4 = vector.broadcast %3 : vector<1x128xf32> to vector<16x128xf32>
    %5 = arith.addf %2, %4 : vector<16x128xf32>
    %cst_5 = arith.constant 0.797884583 : f32
    %6 = vector.broadcast %cst_5 : f32 to vector<16x128xf32>
    %7 = arith.mulf %6, %5 : vector<16x128xf32>
    %8 = arith.mulf %5, %5 : vector<16x128xf32>
    %cst_6 = arith.constant 4.471500e-02 : f32
    %9 = vector.broadcast %cst_6 : f32 to vector<16x128xf32>
    %10 = arith.mulf %9, %8 : vector<16x128xf32>
    %cst_7 = arith.constant 1.000000e+00 : f32
    %11 = vector.broadcast %cst_7 : f32 to vector<16x128xf32>
    %12 = arith.addf %11, %10 : vector<16x128xf32>
    %13 = arith.mulf %7, %12 : vector<16x128xf32>
    %cst_8 = arith.constant 5.000000e-01 : f32
    %14 = vector.broadcast %cst_8 : f32 to vector<16x128xf32>
    %15 = arith.mulf %14, %5 : vector<16x128xf32>
    %16 = math.tanh %13 : vector<16x128xf32>
    %cst_9 = arith.constant 1.000000e+00 : f32
    %17 = vector.broadcast %cst_9 : f32 to vector<16x128xf32>
    %18 = arith.addf %17, %16 : vector<16x128xf32>
    %19 = arith.mulf %15, %18 : vector<16x128xf32>
    %20 = arith.truncf %19 : vector<16x128xf32> to vector<16x128xbf16>
    %c0_10 = arith.constant 0 : index
    %c0_11 = arith.constant 0 : index
    %21 = vector.load %arg4[%c0_10, %c0_11] : memref<128x128xbf16, #tpu.memory_space<vmem>>, vector<128x128xbf16>
    %cst_12 = arith.constant dense<0.000000e+00> : vector<16x128xf32>
    %22 = tpu.matmul %20, %21, %cst_12 {dimension_numbers = #tpu.dot_dimension_numbers<[1], [0], [0], [1], [0, 0, 1, 1], [], []>} : vector<16x128xbf16>, vector<128x128xbf16>, vector<16x128xf32> -> vector<16x128xf32>
    %c0_13 = arith.constant 0 : index
    %c0_14 = arith.constant 0 : index
    %23 = vector.load %arg5[%c0_13, %c0_14] : memref<1x128xf32, #tpu.memory_space<vmem>>, vector<1x128xf32>
    %24 = vector.broadcast %23 : vector<1x128xf32> to vector<16x128xf32>
    %25 = arith.addf %22, %24 : vector<16x128xf32>
    %c0_15 = arith.constant 0 : index
    %c0_16 = arith.constant 0 : index
    %26 = vector.load %arg6[%c0_15, %c0_16] : memref<16x128xf32, #tpu.memory_space<vmem>>, vector<16x128xf32>
    tpu.vector_store %arg6[%c0_15, %c0_16], %25 {strides = array<i32>} : memref<16x128xf32, #tpu.memory_space<vmem>>, vector<16x128xf32>,
    return
  }
  func.func @transform_0(%arg0: i32) -> (i32, i32) {
    %c0_i32 = arith.constant 0 : i32
    %c0_i32_0 = arith.constant 0 : i32
    return %arg0, %c0_i32 : i32, i32
  }
  func.func @transform_1(%arg0: i32) -> (i32, i32) {
    %c0_i32 = arith.constant 0 : i32
    %c0_i32_0 = arith.constant 0 : i32
    %c0_i32_1 = arith.constant 0 : i32
    return %c0_i32, %c0_i32_0 : i32, i32
  }
  func.func @transform_2(%arg0: i32) -> (i32, i32) {
    %c0_i32 = arith.constant 0 : i32
    %c0_i32_0 = arith.constant 0 : i32
    %c0_i32_1 = arith.constant 0 : i32
    return %c0_i32, %c0_i32_0 : i32, i32
  }
  func.func @transform_3(%arg0: i32) -> (i32, i32) {
    %c0_i32 = arith.constant 0 : i32
    %c0_i32_0 = arith.constant 0 : i32
    %c0_i32_1 = arith.constant 0 : i32
    return %c0_i32, %c0_i32_0 : i32, i32
  }
  func.func @transform_4(%arg0: i32) -> (i32, i32) {
    %c0_i32 = arith.constant 0 : i32
    %c0_i32_0 = arith.constant 0 : i32
    %c0_i32_1 = arith.constant 0 : i32
    return %c0_i32, %c0_i32_0 : i32, i32
  }
  func.func @transform_5(%arg0: i32) -> (i32, i32) {
    %c0_i32 = arith.constant 0 : i32
    %c0_i32_0 = arith.constant 0 : i32
    return %arg0, %c0_i32 : i32, i32
  }
}

</mosaic_0001>

<bundles_post_ra>
// kernel: _lambda_.1
= control target key start
LH: loop header
LB: loop body
LE: loop exit
PB: predicated region body
PF: predicated region fallthrough
CT: control target
= control target key end

     0   :  { %10 = vsyncpa [#allocation3], 0  ;;  %s453_s0 = inlined_call_operand.vmem [shape: bf16[16,128], index: 0, kind: input, shape index: {}]   ;;  %s454_s1 = inlined_call_operand.hbm [shape: bf16[128,128], index: 1, kind: input, shape index: {}]   ;;  %s455_s2 = inlined_call_operand.vmem [shape: f32[1,128], index: 2, kind: input, shape index: {}, may-alias: {2,4}]   ;;  %s456_s3 = inlined_call_operand.hbm [shape: bf16[128,128], index: 3, kind: input, shape index: {}]   ;;  %s457_s4 = inlined_call_operand.vmem [shape: f32[1,128], index: 4, kind: input, shape index: {}, may-alias: {2,4}]   ;;  %s458_s5 = inlined_call_operand.vmem [shape: f32[16,128], index: 5, kind: output, shape index: {}]  }
   0x1   :  { %s18_s20 = sshll.u32 %s454_s1, 4  ;;  %s19_s20 = int_to_ptr.hbm [resolvable:$true] %s18_s20 }
   0x2   :  { %11 = vsyncpa [#allocation5], 0  ;;  %s398_s21 = smov [#allocation2]   ;;  %s33_s25 = sshll.u32 %s456_s3, 4  ;;  %s34_s25 = int_to_ptr.hbm [resolvable:$true] %s33_s25 }
   0x3   :  { %s20_s22 = sshll.u32 %s398_s21, 4  ;;  %s399_s26 = smov 64   ;;  %s21_s22 = int_to_ptr.vmem [resolvable:$true] %s20_s22 }
   0x4   :  { %s400_s27 = smov 4   ;;  %s401_s28 = smov [#allocation4]  }
   0x5   :  { %26 = dma.hbm_to_vmem [thread:$0]  %s19_s20, 1024, %s21_s22, [#allocation3], %s399_s26, %s399_s26, %s400_s27  }
   0x6   :  { %s35_s29 = sshll.u32 %s401_s28, 4  ;;  %s36_s29 = int_to_ptr.vmem [resolvable:$true] %s35_s29 }
   0x7   :  { %41 = dma.hbm_to_vmem [thread:$0]  %s34_s25, 1024, %s36_s29, [#allocation5], %s399_s26, %s399_s26, %s400_s27  }
   0x8   :  { %394 = dma.done.wait [#allocation3], 1024  }
   0x9   :  { %395 = vsyncadd [#allocation3], 4294966272 }
   0xa   :  { %396 = dma.done.wait [#allocation5], 1024  }
   0xb   :  { %397 = vsyncadd [#allocation5], 4294966272  ;;  %v327_v0 = vld [vmem:[#allocation2 + $0x38] sm:$0xff]  ;;  %v326_v1 = vld [vmem:[#allocation2 + $0x30] sm:$0xff] }
   0xc   :  { %128 = vmatpush.bf16.msra.mxu0 %v327_v0  ;;  %v325_v2 = vld [vmem:[#allocation2 + $0x28] sm:$0xff]  ;;  %v324_v3 = vld [vmem:[#allocation2 + $0x20] sm:$0xff]  ;;  %v323_v4 = vld [vmem:[#allocation2 + $0x18] sm:$0xff] }
   0xd   :  { %v322_v5 = vld [vmem:[#allocation2 + $0x10] sm:$0xff]  ;;  %v321_v6 = vld [vmem:[#allocation2 + $0x8] sm:$0xff]  ;;  %v320_v7 = vld [vmem:[#allocation2] sm:$0xff] }
   0xe   :  { %v319_v8 = vld [vmem:[%s453_s0] sm:$0xff]  ;;  %v335_v9 = vld [vmem:[#allocation4 + $0x38] sm:$0xff]  ;;  %v334_v10 = vld [vmem:[#allocation4 + $0x30] sm:$0xff] }
   0xf   :  { %229 = vmatpush.bf16.msra.mxu1 %v335_v9  ;;  %v333_v11 = vld [vmem:[#allocation4 + $0x28] sm:$0xff]  ;;  %v332_v12 = vld [vmem:[#allocation4 + $0x20] sm:$0xff]  ;;  %v331_v13 = vld [vmem:[#allocation4 + $0x18] sm:$0xff] }
  0x10   :  { %129 = vmatpush.bf16.msra.mxu0 %v326_v1  ;;  %v330_v14 = vld [vmem:[#allocation4 + $0x10] sm:$0xff]  ;;  %v329_v15 = vld [vmem:[#allocation4 + $0x8] sm:$0xff]  ;;  %v328_v16 = vld [vmem:[#allocation4] sm:$0xff] }
  0x11   :  { %v340_v17 = vld [vmem:[%s455_s2] ss:$0 sm:$0xff] }
  0x12   :  { %v341_v41 = vld [vmem:[%s457_s4] ss:$0 sm:$0xff] }
  0x13   :  { %230 = vmatpush.bf16.msra.mxu1 %v334_v10 }
  0x14   :  { %130 = vmatpush.bf16.msra.mxu0 %v325_v2 }
  0x17   :  { %231 = vmatpush.bf16.msra.mxu1 %v333_v11 }
  0x18   :  { %131 = vmatpush.bf16.msra.mxu0 %v324_v3 }
  0x1b   :  { %232 = vmatpush.bf16.msra.mxu1 %v332_v12 }
  0x1c   :  { %132 = vmatpush.bf16.msra.mxu0 %v323_v4 }
  0x1f   :  { %233 = vmatpush.bf16.msra.mxu1 %v331_v13 }
  0x20   :  { %133 = vmatpush.bf16.msra.mxu0 %v322_v5 }
  0x23   :  { %234 = vmatpush.bf16.msra.mxu1 %v330_v14 }
  0x24   :  { %134 = vmatpush.bf16.msra.mxu0 %v321_v6 }
  0x27   :  { %235 = vmatpush.bf16.msra.mxu1 %v329_v15 }
  0x28   :  { %135 = vmatpush.bf16.msra.mxu0 %v320_v7 }
  0x2b   :  { %136 = vmatmul.bf16.vlgmr.msra.gmra.mxu0 %v319_v8  ;;  %236 = vmatpush.bf16.msra.mxu1 %v328_v16 }
  0xa8   :  { %v137_v18 = vpop.f32.mrf.mxu0 }
  0xa9   :  { %v138_v19 = vadd.f32 %v340_v17, %v137_v18 }
  0xab   :  { %v144_v20 = vmul.f32 %v138_v19, %v138_v19  ;;  %v142_v24 = vmul.f32 0.7978846, %v138_v19  ;;  %v152_v35 = vmul.f32 0.5, %v138_v19 }
  0xad   :  { %v146_v21 = vmul.f32 0.044715, %v144_v20 }
  0xaf   :  { %v148_v22 = vadd.f32 1.0, %v146_v21 }
  0xb0   :  { %v139_v23 = vpop.f32.mrf.mxu0 }
  0xb1   :  { %v140_v25 = vadd.f32 %v340_v17, %v139_v23  ;;  %v150_v26 = vmul.f32 %v148_v22, %v142_v24 }
  0xb3   :  { %v145_v27 = vmul.f32 %v140_v25, %v140_v25  ;;  %v143_v29 = vmul.f32 0.7978846, %v140_v25  ;;  %342 = vtanh.f32 %v150_v26  ;;  %v153_v36 = vmul.f32 0.5, %v140_v25 }
  0xb5   :  { %v147_v28 = vmul.f32 0.044715, %v145_v27 }
  0xb7   :  { %v149_v30 = vadd.f32 1.0, %v147_v28 }
  0xb9   :  { %v151_v31 = vmul.f32 %v149_v30, %v143_v29  ;;  %v343_v32 = vpop.eup %342 }
  0xba   :  { %v156_v33 = vadd.f32 1.0, %v343_v32 }
  0xbb   :  { %344 = vtanh.f32 %v151_v31 }
  0xbc   :  { %v158_v38 = vmul.f32 %v156_v33, %v152_v35 }
  0xc1   :  { %v345_v34 = vpop.eup %344 }
  0xc2   :  { %v157_v37 = vadd.f32 1.0, %v345_v34 }
  0xc4   :  { %v159_v39 = vmul.f32 %v157_v37, %v153_v36 }
  0xc6   :  { %v160_v40 = vpack.c.bf16 %v159_v39, %v158_v38 }
  0xc8   :  { %237 = vmatmul.bf16.vlgmr.msra.gmra.mxu1 %v160_v40 }
 0x145   :  { %v238_v42 = vpop.f32.mrf.mxu1 }
 0x146   :  { %v239_v43 = vadd.f32 %v341_v41, %v238_v42 }
 0x148   :  { %243 = vst [vmem:[%s458_s5] sm:$0xff] %v239_v43 }
 0x14d   :  { %v240_v44 = vpop.f32.mrf.mxu1 }
 0x14e   :  { %v241_v45 = vadd.f32 %v341_v41, %v240_v44 }
 0x150   :  { %244 = vst [vmem:[%s458_s5 + $0x8] sm:$0xff] %v241_v45 }
 0x151   :  { %249 = vsyncpa [#allocation3], 1 }
 0x152   :  { %250 = vsyncpa [#allocation5], 1 }

</bundles_post_ra>
